<compile_context>
chip_gen: v7x
topology: tpu7x:2x2x1
jax: 0.10.0
libtpu: 0.0.40
codegen_flags: <defaults>
</compile_context>

<pallas_src>
import math

import jax
import jax.numpy as jnp
from jax.experimental import pallas as pl
from jax.experimental.pallas import tpu as pltpu


def _pe_add_kernel(x_ref, pe_ref, o_ref):
    """x_ref: (B, tl), pe_ref: (1, tl), o_ref: (B, tl) — pure VPU broadcast add."""
    o_ref[...] = x_ref[...] + pe_ref[...]


def make_positional_encoding(max_seq_length: int, d_model: int,
                             dtype=jnp.float32) -> jax.Array:
    """Builds the (max_seq_length, d_model) sinusoidal table (== the module buffer)."""
    position = jnp.arange(max_seq_length, dtype=jnp.float32)[:, None]
    div_term = jnp.exp(jnp.arange(0, d_model, 2, dtype=jnp.float32)
                       * -(math.log(10000.0) / d_model))
    angles = position * div_term                       # (max_seq, ceil(d_model/2))
    pe = jnp.zeros((max_seq_length, d_model), jnp.float32)
    pe = pe.at[:, 0::2].set(jnp.sin(angles))
    # Odd d_model safe: cos gets only floor(d_model/2) columns.
    pe = pe.at[:, 1::2].set(jnp.cos(angles[:, : d_model // 2]))
    return pe.astype(dtype)


def _vmem_capacity_bytes() -> int:
    """Per-core VMEM capacity; conservative fallback (v7x per-TC) if query fails."""
    try:
        return int(pltpu.get_tpu_info().vmem_capacity_bytes)
    except Exception:  # noqa: BLE001 - robustness across jax versions/backends
        return 64 * 1024 * 1024


def _pick_flat_tile(L: int, B: int, itemsize: int, vmem_cap: int) -> int:
    """Largest lane-dense (multiple-of-128) flat tile that fits the VMEM budget."""
    if L <= 128:
        return L
    # Budget for double-buffered x, out and pe tiles, leaving compiler headroom.
    budget = max(int(vmem_cap * 0.75) - (4 << 20), 8 << 20)
    bytes_per_col = 2 * (2 * B + 1) * itemsize          # 2 buffers x (x + out + pe)
    tl_vmem = budget // max(1, bytes_per_col)
    tl_target = (8 << 20) // max(1, B * itemsize)       # ~8 MiB x tile target
    tl = min(tl_vmem, tl_target)
    tl = max(128, (tl // 128) * 128)
    return min(L, tl)


@jax.jit
def positional_encoding_forward(x, pe):
    """x: (B, S, d_model), pe: (max_seq, d_model) -> (B, S, d_model)."""
    B, S, D = x.shape
    assert pe.shape[0] >= S and pe.shape[1] == D
    if pe.dtype != x.dtype:
        # Prefer building pe in the model dtype at init time; this is a fallback.
        pe = pe.astype(x.dtype)

    L = S * D
    itemsize = jnp.dtype(x.dtype).itemsize
    vmem_cap = _vmem_capacity_bytes()
    tl = _pick_flat_tile(L, B, itemsize, vmem_cap)

    # Free, layout-preserving reshapes (collapse the trailing dims).
    x2 = x.reshape(B, L)
    pe2 = pe.reshape(1, pe.shape[0] * D)   # index_map only touches the first L cols

    grid = (pl.cdiv(L, tl),)

    needed = 2 * (2 * B + 1) * tl * itemsize
    vmem_limit = int(min(int(vmem_cap * 0.78),           # <=~50 MiB v7x, ~100 MiB v5e/v6e
                         max(32 << 20, needed + (8 << 20))))

    cost = pl.CostEstimate(
        flops=B * L,
        transcendentals=0,
        bytes_accessed=(2 * B * L + L) * itemsize,        # x read + out write + pe once
    )

    out2 = pl.pallas_call(
        _pe_add_kernel,
        out_shape=jax.ShapeDtypeStruct((B, L), x.dtype),
        grid=grid,
        in_specs=[
            pl.BlockSpec((B, tl), lambda l: (0, l)),       # x tile (full batch folded in)
            pl.BlockSpec((1, tl), lambda l: (0, l)),       # pe tile, fetched once per tile
        ],
        out_specs=pl.BlockSpec((B, tl), lambda l: (0, l)),
        compiler_params=pltpu.CompilerParams(
            dimension_semantics=("parallel",),
            vmem_limit_bytes=vmem_limit,
        ),
        cost_estimate=cost,
    )(x2, pe2)

    return out2.reshape(B, S, D)


if __name__ == "__main__":
    key = jax.random.PRNGKey(0)

    # Small shapes consistent with the module's forward.
    B, S, d_model, max_seq = 2, 8, 32, 16
    x = jax.random.normal(key, (B, S, d_model), jnp.float32)
    pe = make_positional_encoding(max_seq, d_model, dtype=x.dtype)

    out = positional_encoding_forward(x, pe)
    out = jax.block_until_ready(out)

    # Reference in plain JAX (exactly the PyTorch forward semantics).
    ref = x + pe[None, :S, :]
    assert out.shape == (B, S, d_model)
    assert jnp.allclose(out, ref, atol=1e-6, rtol=1e-6)

    print("KERNEL_OK")
</pallas_src>

<mosaic_0001>
module attributes {stable_mosaic.version = 11 : i64} {
  func.func @_pe_add_kernel(%arg0: i32, %arg1: memref<2x256xf32, #tpu.memory_space<vmem>>, %arg2: memref<1x256xf32, #tpu.memory_space<vmem>>, %arg3: memref<2x256xf32, #tpu.memory_space<vmem>>) attributes {dimension_semantics = [#tpu.dimension_semantics<parallel>], iteration_bounds = array<i64: 1>, scalar_prefetch = 0 : i64, scratch_operands = 0 : i64, tpu.core_type = #tpu.core_type<tc>, window_params = [{transform_indices = @transform_0, window_bounds = array<i64: 2, 256>}, {transform_indices = @transform_1, window_bounds = array<i64: 1, 256>}, {transform_indices = @transform_2, window_bounds = array<i64: 2, 256>}]} {
    %c0 = arith.constant 0 : index
    %c0_0 = arith.constant 0 : index
    %0 = vector.load %arg1[%c0, %c0_0] : memref<2x256xf32, #tpu.memory_space<vmem>>, vector<2x256xf32>
    %c0_1 = arith.constant 0 : index
    %c0_2 = arith.constant 0 : index
    %1 = vector.load %arg2[%c0_1, %c0_2] : memref<1x256xf32, #tpu.memory_space<vmem>>, vector<1x256xf32>
    %2 = vector.broadcast %1 : vector<1x256xf32> to vector<2x256xf32>
    %3 = arith.addf %0, %2 : vector<2x256xf32>
    %c0_3 = arith.constant 0 : index
    %c0_4 = arith.constant 0 : index
    %4 = vector.load %arg3[%c0_3, %c0_4] : memref<2x256xf32, #tpu.memory_space<vmem>>, vector<2x256xf32>
    tpu.vector_store %arg3[%c0_3, %c0_4], %3 {strides = array<i32>} : memref<2x256xf32, #tpu.memory_space<vmem>>, vector<2x256xf32>,
    return
  }
  func.func @transform_0(%arg0: i32) -> (i32, i32) {
    %c0_i32 = arith.constant 0 : i32
    %c0_i32_0 = arith.constant 0 : i32
    return %c0_i32, %arg0 : i32, i32
  }
  func.func @transform_1(%arg0: i32) -> (i32, i32) {
    %c0_i32 = arith.constant 0 : i32
    %c0_i32_0 = arith.constant 0 : i32
    return %c0_i32, %arg0 : i32, i32
  }
  func.func @transform_2(%arg0: i32) -> (i32, i32) {
    %c0_i32 = arith.constant 0 : i32
    %c0_i32_0 = arith.constant 0 : i32
    return %c0_i32, %arg0 : i32, i32
  }
}

</mosaic_0001>

<bundles_post_ra>
// kernel: positional_encoding_forward.1
= control target key start
LH: loop header
LB: loop body
LE: loop exit
PB: predicated region body
PF: predicated region fallthrough
CT: control target
= control target key end

     0   :  { %v14_v0 = vlaneseq  ;;  %v38_v1 = vmov 1983009808   ;;  %s63_s1 = inlined_call_operand.vmem [shape: f32[1,512], index: 1, kind: input, shape index: {}]   ;;  %s64_s0 = inlined_call_operand.vmem [shape: f32[2,256], index: 0, kind: input, shape index: {}]   ;;  %s65_s2 = inlined_call_operand.vmem [shape: f32[2,256], index: 2, kind: output, shape index: {}]  }
   0x1   :  { %v24_v2 = vunpack.c.l.s4 %v38_v1  ;;  %v12_v4 = vld [vmem:[%s63_s1] sm:$0x3] }
   0x2   :  { %v15_v3 = vshrl.u32 %v14_v0, 7  ;;  %v11_v12 = vld [vmem:[%s64_s0] sm:$0xf] }
   0x3   :  { %v25_v5 = vunpack.c.0.s8 %v24_v2 }
   0x4   :  { %v16_v6 = vsub.s32 0, %v15_v3  ;;  %v20_v7 = vsub.s32 1, %v15_v3 }
   0x5   :  { %v28_v10 = vsub.s32 %v25_v5, %v15_v3 }
   0x6   :  { %v17_v8 = vrot.slane %v12_v4, %v16_v6  ;;  %v21_v9 = vrot.slane %v12_v4, %v20_v7 }
   0x8   :  { %v22_v11 = vcombine.low %v17_v8, %v21_v9 }
   0xa   :  { %v29_v13 = vrot.slane %v22_v11, %v28_v10 }
   0xc   :  { %v31_v14 = vadd.f32 %v29_v13, %v11_v12 }
   0xe   :  { %32 = vst [vmem:[%s65_s2] sm:$0xf] %v31_v14 }

</bundles_post_ra>
